<compile_context>
chip_gen: v5e
topology: v5e:2x2
jax: 0.10.0
libtpu: 0.0.40
codegen_flags: <defaults>
</compile_context>

<pallas_src>
import functools

import jax
import jax.numpy as jnp
from jax.experimental import pallas as pl
from jax.experimental.pallas import tpu as pltpu


def _round_up(x, m):
    return ((x + m - 1) // m) * m


def _critic_mlp_kernel(sT_ref, zT_ref, w1sT_ref, w1zT_ref, b1_ref,
                       w2T_ref, b2_ref, w3T_ref, b3_ref, o_ref):
    """Fused critic MLP forward for one batch tile, batch on the lane axis.

    relu(cat(s, z) @ W1.T + b1) -> relu(@ W2.T + b2) -> @ w3.T + b3
    computed as (features, tile_batch) so every intermediate and the final
    store are lane-dense and the MXU N-dim is the full batch tile.
    """
    sT = sT_ref[...]                                         # (obs_dim, TB)
    zT = zT_ref[...]                                         # (prior,   TB)

    # torch.cat((s, z), dim=1) fused: two dots against the split halves of W1.
    h1 = jnp.dot(w1sT_ref[...], sT, preferred_element_type=jnp.float32)
    h1 = h1 + jnp.dot(w1zT_ref[...], zT, preferred_element_type=jnp.float32)
    h1 = jnp.maximum(h1 + b1_ref[...], 0.0)                  # (H1, TB)

    h2 = jnp.dot(w2T_ref[...], h1, preferred_element_type=jnp.float32)
    h2 = jnp.maximum(h2 + b2_ref[...], 0.0)                  # (H2, TB)

    # Output head: (1, H2) x (H2, TB) contraction -> lane-dense (1, TB) row.
    out = jnp.dot(w3T_ref[...], h2, preferred_element_type=jnp.float32)
    o_ref[...] = (out + b3_ref[0, 0]).astype(o_ref.dtype)    # (1, TB)


def critic_forward_batched(s, z, params, *, block_b=512):
    """Batched critic forward. s: (B, obs_dim), z: (B, prior_size) -> (B, 1)."""
    w1, b1, w2, b2, w3, b3 = params
    B, obs_dim = s.shape
    prior_size = z.shape[1]

    # Batch lives on the lane axis: transpose the activations once here.
    sT = s.astype(jnp.float32).T                 # (obs_dim, B)
    zT = z.astype(jnp.float32).T                 # (prior,   B)

    # Transposed / split weights (concat fused into the first layer).
    w1sT = w1[:obs_dim].T                        # (H1, obs_dim)
    w1zT = w1[obs_dim:].T                        # (H1, prior)
    b1c = b1.reshape(-1, 1)                      # (H1, 1)
    w2T = w2.T                                   # (H2, H1)
    b2c = b2.reshape(-1, 1)                      # (H2, 1)
    w3T = w3.reshape(1, -1)                      # (1, H2)
    b3s = b3.reshape(1, 1)                       # (1, 1) true scalar -> SMEM

    # Lane tile: multiple of 128 (lane width). Keep the batch grid >= 2 steps
    # whenever B allows so the "parallel" axis can shard across v7x's two
    # TensorCores; on v5e/v6e a single big tile is equally fine.
    tb = min(block_b, max(128, _round_up(pl.cdiv(B, 2), 128)))
    Bp = _round_up(B, tb)
    if Bp != B:
        sT = jnp.pad(sT, ((0, 0), (0, Bp - B)))
        zT = jnp.pad(zT, ((0, 0), (0, Bp - B)))

    # Weights/biases: constant block index across the batch grid axis -> DMA'd
    # to VMEM once and resident; only the activation tiles stream.
    resident = lambda a: pl.BlockSpec(a.shape, lambda i: (0,) * a.ndim)

    out_row = pl.pallas_call(
        _critic_mlp_kernel,
        out_shape=jax.ShapeDtypeStruct((1, Bp), jnp.float32),
        grid=(Bp // tb,),
        in_specs=[
            pl.BlockSpec((obs_dim, tb), lambda i: (0, i)),
            pl.BlockSpec((prior_size, tb), lambda i: (0, i)),
            resident(w1sT), resident(w1zT), resident(b1c),
            resident(w2T), resident(b2c), resident(w3T),
            pl.BlockSpec(memory_space=pltpu.MemorySpace.SMEM),   # b3 scalar
        ],
        out_specs=pl.BlockSpec((1, tb), lambda i: (0, i)),
        compiler_params=pltpu.CompilerParams(
            dimension_semantics=("parallel",)),   # shards batch over v7x's 2 TCs
    )(sT, zT, w1sT, w1zT, b1c, w2T, b2c, w3T, b3s)

    # Back to (B, 1); padded batch columns are dropped here.
    return out_row.reshape(-1, 1)[:B]


def critic_forward(s, z, params):
    """Single-sample path matching Critic.forward(s, z) exactly.

    s: raw state vector (obs_dim,), z: (1, prior_size). Returns (1, 1).
    """
    # TODO(synk): at B=1 a Pallas dispatch is overhead-dominated; batch
    # requests upstream (or use plain XLA) when single-call latency matters.
    s_b = jnp.asarray(s, jnp.float32)[None, :]     # torch.Tensor([s])
    z_b = jnp.asarray(z, jnp.float32)
    return critic_forward_batched(s_b, z_b, params, block_b=128)


def init_critic_params(key, obs_dim, prior_size, hidden_sizes):
    """Deterministic synthetic parameters (no checkpoint load)."""
    in_size = obs_dim + prior_size
    sizes = [in_size] + list(hidden_sizes) + [1]
    params = []
    for i in range(len(sizes) - 1):
        key, kw, kb = jax.random.split(key, 3)
        fan_in = sizes[i]
        w = jax.random.normal(kw, (sizes[i], sizes[i + 1]),
                              dtype=jnp.float32) / jnp.sqrt(float(fan_in))
        b = jax.random.normal(kb, (1, sizes[i + 1]), dtype=jnp.float32) * 0.01
        params += [w, b]
    return tuple(params)


def _reference_forward(s_batch, z_batch, params):
    """Pure-JAX reference for correctness check."""
    x = jnp.concatenate([s_batch, z_batch], axis=1)
    w1, b1, w2, b2, w3, b3 = params
    h = jnp.maximum(x @ w1 + b1, 0.0)
    h = jnp.maximum(h @ w2 + b2, 0.0)
    return h @ w3 + b3


if __name__ == "__main__":
    obs_dim = 16        # env.observation_space.shape[0]
    prior_size = 8      # prior.event_shape[0]
    hidden_sizes = (32, 32)
    batch = 256         # batched evaluation path (-> 2 grid steps of 128)

    key = jax.random.PRNGKey(0)
    k_s, k_z, k_sb, k_zb, k_p = jax.random.split(key, 5)

    params = init_critic_params(k_p, obs_dim, prior_size, hidden_sizes)

    # --- single-sample path (exact Critic.forward semantics) ---
    s1 = jax.random.normal(k_s, (obs_dim,), dtype=jnp.float32)
    z1 = jax.random.normal(k_z, (1, prior_size), dtype=jnp.float32)
    v1 = jax.block_until_ready(critic_forward(s1, z1, params))
    ref1 = _reference_forward(s1[None, :], z1, params)
    assert v1.shape == (1, 1)
    assert jnp.allclose(v1, ref1, atol=1e-4, rtol=1e-4)

    # --- batched path (amortizes dispatch, weights stay VMEM-resident) ---
    sb = jax.random.normal(k_sb, (batch, obs_dim), dtype=jnp.float32)
    zb = jax.random.normal(k_zb, (batch, prior_size), dtype=jnp.float32)
    batched = jax.jit(functools.partial(critic_forward_batched, block_b=512))
    vb = jax.block_until_ready(batched(sb, zb, params))
    refb = _reference_forward(sb, zb, params)
    assert vb.shape == (batch, 1)
    assert jnp.allclose(vb, refb, atol=1e-4, rtol=1e-4)

    print("KERNEL_OK")
</pallas_src>

<mosaic_0001>
module attributes {stable_mosaic.version = 11 : i64} {
  func.func @_critic_mlp_kernel(%arg0: i32, %arg1: memref<16x128xf32, #tpu.memory_space<vmem>>, %arg2: memref<8x128xf32, #tpu.memory_space<vmem>>, %arg3: memref<32x16xf32, #tpu.memory_space<vmem>>, %arg4: memref<32x8xf32, #tpu.memory_space<vmem>>, %arg5: memref<32x1xf32, #tpu.memory_space<vmem>>, %arg6: memref<32x32xf32, #tpu.memory_space<vmem>>, %arg7: memref<32x1xf32, #tpu.memory_space<vmem>>, %arg8: memref<1x32xf32, #tpu.memory_space<vmem>>, %arg9: memref<1x1xf32, #tpu.memory_space<smem>>, %arg10: memref<1x128xf32, #tpu.memory_space<vmem>>) attributes {dimension_semantics = [#tpu.dimension_semantics<parallel>], iteration_bounds = array<i64: 1>, scalar_prefetch = 0 : i64, scratch_operands = 0 : i64, tpu.core_type = #tpu.core_type<tc>, window_params = [{transform_indices = @transform_0, window_bounds = array<i64: 16, 128>}, {transform_indices = @transform_1, window_bounds = array<i64: 8, 128>}, {pipeline_mode = #tpu.pipeline_mode<synchronous>, transform_indices = @transform_2, window_bounds = array<i64: 32, 16>}, {pipeline_mode = #tpu.pipeline_mode<synchronous>, transform_indices = @transform_3, window_bounds = array<i64: 32, 8>}, {pipeline_mode = #tpu.pipeline_mode<synchronous>, transform_indices = @transform_4, window_bounds = array<i64: 32, 1>}, {pipeline_mode = #tpu.pipeline_mode<synchronous>, transform_indices = @transform_5, window_bounds = array<i64: 32, 32>}, {pipeline_mode = #tpu.pipeline_mode<synchronous>, transform_indices = @transform_6, window_bounds = array<i64: 32, 1>}, {pipeline_mode = #tpu.pipeline_mode<synchronous>, transform_indices = @transform_7, window_bounds = array<i64: 1, 32>}, {transform_indices = @transform_8, window_bounds = array<i64: 1, 1>}, {transform_indices = @transform_9, window_bounds = array<i64: 1, 128>}]} {
    %c0 = arith.constant 0 : index
    %c0_0 = arith.constant 0 : index
    %0 = vector.load %arg1[%c0, %c0_0] : memref<16x128xf32, #tpu.memory_space<vmem>>, vector<16x128xf32>
    %c0_1 = arith.constant 0 : index
    %c0_2 = arith.constant 0 : index
    %1 = vector.load %arg2[%c0_1, %c0_2] : memref<8x128xf32, #tpu.memory_space<vmem>>, vector<8x128xf32>
    %c0_3 = arith.constant 0 : index
    %c0_4 = arith.constant 0 : index
    %2 = vector.load %arg3[%c0_3, %c0_4] : memref<32x16xf32, #tpu.memory_space<vmem>>, vector<32x16xf32>
    %cst = arith.constant dense<0.000000e+00> : vector<32x128xf32>
    %3 = tpu.matmul %2, %0, %cst {dimension_numbers = #tpu.dot_dimension_numbers<[1], [0], [0], [1], [0, 0, 1, 1], [], []>} : vector<32x16xf32>, vector<16x128xf32>, vector<32x128xf32> -> vector<32x128xf32>
    %c0_5 = arith.constant 0 : index
    %c0_6 = arith.constant 0 : index
    %4 = vector.load %arg4[%c0_5, %c0_6] : memref<32x8xf32, #tpu.memory_space<vmem>>, vector<32x8xf32>
    %cst_7 = arith.constant dense<0.000000e+00> : vector<32x128xf32>
    %5 = tpu.matmul %4, %1, %cst_7 {dimension_numbers = #tpu.dot_dimension_numbers<[1], [0], [0], [1], [0, 0, 1, 1], [], []>} : vector<32x8xf32>, vector<8x128xf32>, vector<32x128xf32> -> vector<32x128xf32>
    %6 = arith.addf %3, %5 : vector<32x128xf32>
    %c0_8 = arith.constant 0 : index
    %c0_9 = arith.constant 0 : index
    %7 = vector.load %arg5[%c0_8, %c0_9] : memref<32x1xf32, #tpu.memory_space<vmem>>, vector<32x1xf32>
    %8 = vector.broadcast %7 : vector<32x1xf32> to vector<32x128xf32>
    %9 = arith.addf %6, %8 : vector<32x128xf32>
    %cst_10 = arith.constant 0.000000e+00 : f32
    %10 = vector.broadcast %cst_10 : f32 to vector<32x128xf32>
    %11 = arith.maximumf %9, %10 : vector<32x128xf32>
    %c0_11 = arith.constant 0 : index
    %c0_12 = arith.constant 0 : index
    %12 = vector.load %arg6[%c0_11, %c0_12] : memref<32x32xf32, #tpu.memory_space<vmem>>, vector<32x32xf32>
    %cst_13 = arith.constant dense<0.000000e+00> : vector<32x128xf32>
    %13 = tpu.matmul %12, %11, %cst_13 {dimension_numbers = #tpu.dot_dimension_numbers<[1], [0], [0], [1], [0, 0, 1, 1], [], []>} : vector<32x32xf32>, vector<32x128xf32>, vector<32x128xf32> -> vector<32x128xf32>
    %c0_14 = arith.constant 0 : index
    %c0_15 = arith.constant 0 : index
    %14 = vector.load %arg7[%c0_14, %c0_15] : memref<32x1xf32, #tpu.memory_space<vmem>>, vector<32x1xf32>
    %15 = vector.broadcast %14 : vector<32x1xf32> to vector<32x128xf32>
    %16 = arith.addf %13, %15 : vector<32x128xf32>
    %cst_16 = arith.constant 0.000000e+00 : f32
    %17 = vector.broadcast %cst_16 : f32 to vector<32x128xf32>
    %18 = arith.maximumf %16, %17 : vector<32x128xf32>
    %c0_17 = arith.constant 0 : index
    %c0_18 = arith.constant 0 : index
    %19 = vector.load %arg8[%c0_17, %c0_18] : memref<1x32xf32, #tpu.memory_space<vmem>>, vector<1x32xf32>
    %cst_19 = arith.constant dense<0.000000e+00> : vector<1x128xf32>
    %20 = tpu.matmul %19, %18, %cst_19 {dimension_numbers = #tpu.dot_dimension_numbers<[1], [0], [0], [1], [0, 0, 1, 1], [], []>} : vector<1x32xf32>, vector<32x128xf32>, vector<1x128xf32> -> vector<1x128xf32>
    %c0_20 = arith.constant 0 : index
    %c0_21 = arith.constant 0 : index
    %21 = memref.load %arg9[%c0_20, %c0_21] : memref<1x1xf32, #tpu.memory_space<smem>>
    %22 = vector.broadcast %21 : f32 to vector<1x128xf32>
    %23 = arith.addf %20, %22 : vector<1x128xf32>
    %c0_22 = arith.constant 0 : index
    %c0_23 = arith.constant 0 : index
    %24 = vector.load %arg10[%c0_22, %c0_23] : memref<1x128xf32, #tpu.memory_space<vmem>>, vector<1x128xf32>
    tpu.vector_store %arg10[%c0_22, %c0_23], %23 {strides = array<i32>} : memref<1x128xf32, #tpu.memory_space<vmem>>, vector<1x128xf32>,
    return
  }
  func.func @transform_0(%arg0: i32) -> (i32, i32) {
    %c0_i32 = arith.constant 0 : i32
    %c0_i32_0 = arith.constant 0 : i32
    return %c0_i32, %arg0 : i32, i32
  }
  func.func @transform_1(%arg0: i32) -> (i32, i32) {
    %c0_i32 = arith.constant 0 : i32
    %c0_i32_0 = arith.constant 0 : i32
    return %c0_i32, %arg0 : i32, i32
  }
  func.func @transform_2(%arg0: i32) -> (i32, i32) {
    %c0_i32 = arith.constant 0 : i32
    %c0_i32_0 = arith.constant 0 : i32
    %c0_i32_1 = arith.constant 0 : i32
    return %c0_i32, %c0_i32_0 : i32, i32
  }
  func.func @transform_3(%arg0: i32) -> (i32, i32) {
    %c0_i32 = arith.constant 0 : i32
    %c0_i32_0 = arith.constant 0 : i32
    %c0_i32_1 = arith.constant 0 : i32
    return %c0_i32, %c0_i32_0 : i32, i32
  }
  func.func @transform_4(%arg0: i32) -> (i32, i32) {
    %c0_i32 = arith.constant 0 : i32
    %c0_i32_0 = arith.constant 0 : i32
    %c0_i32_1 = arith.constant 0 : i32
    return %c0_i32, %c0_i32_0 : i32, i32
  }
  func.func @transform_5(%arg0: i32) -> (i32, i32) {
    %c0_i32 = arith.constant 0 : i32
    %c0_i32_0 = arith.constant 0 : i32
    %c0_i32_1 = arith.constant 0 : i32
    return %c0_i32, %c0_i32_0 : i32, i32
  }
  func.func @transform_6(%arg0: i32) -> (i32, i32) {
    %c0_i32 = arith.constant 0 : i32
    %c0_i32_0 = arith.constant 0 : i32
    %c0_i32_1 = arith.constant 0 : i32
    return %c0_i32, %c0_i32_0 : i32, i32
  }
  func.func @transform_7(%arg0: i32) -> (i32, i32) {
    %c0_i32 = arith.constant 0 : i32
    %c0_i32_0 = arith.constant 0 : i32
    %c0_i32_1 = arith.constant 0 : i32
    return %c0_i32, %c0_i32_0 : i32, i32
  }
  func.func @transform_8(%arg0: i32) -> (i32, i32) {
    %c0_i32 = arith.constant 0 : i32
    %c0_i32_0 = arith.constant 0 : i32
    %c0_i32_1 = arith.constant 0 : i32
    return %c0_i32, %c0_i32_0 : i32, i32
  }
  func.func @transform_9(%arg0: i32) -> (i32, i32) {
    %c0_i32 = arith.constant 0 : i32
    %c0_i32_0 = arith.constant 0 : i32
    return %c0_i32, %arg0 : i32, i32
  }
}

</mosaic_0001>

<bundles_post_ra>
// kernel: tpu_custom_call.1
= control target key start
LH: loop header
LB: loop body
LE: loop exit
PB: predicated region body
PF: predicated region fallthrough
CT: control target
= control target key end

     0   :  { %vm45_vm0 = vcmask 64512   ;;  %vm87_vm1 = vcmask 130048   ;;  %v326_v6 = vmov 0   ;;  %s469_s0 = inlined_call_operand.vmem [shape: f32[16,128], index: 0, kind: input, shape index: {}]   ;;  %s470_s1 = inlined_call_operand.vmem [shape: f32[8,128], index: 1, kind: input, shape index: {}]   ;;  %s471_s2 = inlined_call_operand.vmem [shape: f32[32,16], index: 2, kind: input, shape index: {}]   ;;  %s472_s3 = inlined_call_operand.vmem [shape: f32[32,8], index: 3, kind: input, shape index: {}]   ;;  %s473_s4 = inlined_call_operand.vmem [shape: f32[32,1], index: 4, kind: input, shape index: {}]   ;;  %s474_s5 = inlined_call_operand.vmem [shape: f32[32,32], index: 5, kind: input, shape index: {}]   ;;  %s475_s6 = inlined_call_operand.vmem [shape: f32[32,1], index: 6, kind: input, shape index: {}]   ;;  %s476_s7 = inlined_call_operand.vmem [shape: f32[1,32], index: 7, kind: input, shape index: {}]   ;;  %s477_s8 = inlined_call_operand.<no memory space> [shape: f32[1,1], index: 8, kind: input, shape index: {}]   ;;  %s478_s9 = inlined_call_operand.hbm [shape: f32[1,128], index: 9, kind: output, shape index: {}]  }
   0x1   :  { %v35_v0 = vld [vmem:[%s469_s0 + $0x8] sm:$0xff]  ;;  %v36_v1 = vld [vmem:[%s470_s1] sm:$0xff]  ;;  %298 = vset.pattern.permute.xlu1 %v326_v6  ;;  %v132_v7 = vld [vmem:[%s473_s4 + $0x18] sm:$0xff]  ;;  %297 = vset.pattern.permute.xlu0 %v326_v6 }
   0x2   :  { %v34_v2 = vld [vmem:[%s469_s0] sm:$0xff]  ;;  %114 = vmatpush.msra.mxu1 %v35_v0  ;;  %73 = vmatpush.msra.mxu0 %v36_v1  ;;  %v130_v5 = vld [vmem:[%s473_s4 + $0x8] sm:$0xff] }
   0x3   :  { %v41_v3 = vld [vmem:[%s472_s3] sm:$0xff]  ;;  %140 = vperm.xlu1 %298, %v130_v5   ;;  %150 = vperm.xlu0 %297, %v132_v7  }
   0x4   :  { %v37_v4 = vld [vmem:[%s471_s2] sm:$0xff]  ;;  %278 = vmatmul.msk.f32.vlgmr.msra.gmra.mxu0 %vm45_vm0, %v41_v3  ;;  %115 = vmatpush.msra.mxu1 %v34_v2 }
   0x5   :  { %282 = vmatmul.msk.f32.vlgmr.msra.gmra.mxu1 %vm87_vm1, %v37_v4  ;;  %299 = vset.pattern.permute.xlu2 %v326_v6 }
   0x6   :  { %15 = vsyncpa [#allocation4], 0  ;;  %v42_v8 = vld [vmem:[%s472_s3 + $0x8] sm:$0xff]  ;;  %v129_v9 = vld [vmem:[%s473_s4] sm:$0xff]  ;;  %vm189_vm2 = vcmask 261120   ;;  %v237_v1 = vstv %s477_s8  ;;  %s327_s29 = smov [#allocation3]  }
   0x7   :  { %v38_v10 = vld [vmem:[%s471_s2 + $0x8] sm:$0xff]  ;;  %v131_v11 = vld [vmem:[%s473_s4 + $0x10] sm:$0xff]  ;;  %v165_v13 = vld [vmem:[%s475_s6] sm:$0xff]  ;;  %s267_s30 = sshll.u32 %s327_s29, 4  ;;  %s269_s12 = sshll.u32 %s478_s9, 4  ;;  %s268_s30 = int_to_ptr.vmem [resolvable:$true] %s267_s30  ;;  %s270_s12 = int_to_ptr.hbm [resolvable:$true] %s269_s12 }
   0x8   :  { %v43_v12 = vld [vmem:[%s472_s3 + $0x10] sm:$0xff]  ;;  %v166_v15 = vld [vmem:[%s475_s6 + $0x8] sm:$0xff]  ;;  %v44_v16 = vld [vmem:[%s472_s3 + $0x18] sm:$0xff] }
   0x9   :  { %v39_v14 = vld [vmem:[%s471_s2 + $0x10] sm:$0xff]  ;;  %v40_v17 = vld [vmem:[%s471_s2 + $0x18] sm:$0xff]  ;;  %v161_v44 = vld [vmem:[%s474_s5] sm:$0xff] }
   0xa   :  { %v168_v27 = vld [vmem:[%s475_s6 + $0x18] sm:$0xff]  ;;  %v167_v39 = vld [vmem:[%s475_s6 + $0x10] sm:$0xff]  ;;  %v162_v46 = vld [vmem:[%s474_s5 + $0x8] sm:$0xff] }
   0xb   :  { %135 = vperm.xlu1 %298, %v129_v9   ;;  %145 = vperm.xlu0 %297, %v131_v11   ;;  %v164_v45 = vld [vmem:[%s474_s5 + $0x18] sm:$0xff]  ;;  %v163_v47 = vld [vmem:[%s474_s5 + $0x10] sm:$0xff]  ;;  %v235_v0 = vld [vmem:[%s476_s7] sm:$0x1] }
   0xc   :  { %279 = vmatmul.msk.f32.gmra.mxu0 %vm45_vm0, %v42_v8  ;;  %186 = vperm.xlu2 %299, %v168_v27  }
   0xd   :  { %283 = vmatmul.msk.f32.gmra.mxu1 %vm87_vm1, %v38_v10 }
  0x13   :  { %171 = vperm.xlu1 %298, %v165_v13   ;;  %176 = vperm.xlu0 %297, %v166_v15  }
  0x14   :  { %280 = vmatmul.msk.f32.gmra.mxu0 %vm45_vm0, %v43_v12  ;;  %181 = vperm.xlu2 %299, %v167_v39  }
  0x15   :  { %284 = vmatmul.msk.f32.gmra.mxu1 %vm87_vm1, %v39_v14 }
  0x1c   :  { %281 = vmatmul.msk.f32.gmra.mxu0 %vm45_vm0, %v44_v16 }
  0x1d   :  { %285 = vmatmul.msk.f32.gmra.mxu1 %vm87_vm1, %v40_v17 }
  0x66   :  { %v187_v48 = vpop.permute.xlu2 %186 }
  0x6e   :  { %v182_v55 = vpop.permute.xlu2 %181 }
  0x75   :  { %v151_v23 = vpop.permute.xlu0 %150  ;;  %v141_v25 = vpop.permute.xlu1 %140 }
  0x7d   :  { %v146_v32 = vpop.permute.xlu0 %145  ;;  %v136_v36 = vpop.permute.xlu1 %135 }
  0x81   :  { %v75_v18 = vpop.f32.mrf.mxu0 }
  0x82   :  { %v117_v19 = vpop.f32.mrf.mxu1 }
  0x83   :  { %v118_v33 = vadd.f32 %v117_v19, %v75_v18 }
  0x85   :  { %v153_v40 = vadd.f32 %v136_v36, %v118_v33  ;;  %v177_v54 = vpop.permute.xlu0 %176  ;;  %v172_v59 = vpop.permute.xlu1 %171 }
  0x87   :  { %v157_v43 = vmax.f32 %v153_v40, 0.0 }
  0x89   :  { %v78_v20 = vpop.f32.mrf.mxu0 }
  0x8a   :  { %v120_v21 = vpop.f32.mrf.mxu1 }
  0x8b   :  { %v121_v30 = vadd.f32 %v120_v21, %v78_v20 }
  0x8d   :  { %v154_v38 = vadd.f32 %v141_v25, %v121_v30 }
  0x8f   :  { %v158_v42 = vmax.f32 %v154_v38, 0.0 }
  0x91   :  { %v81_v22 = vpop.f32.mrf.mxu0 }
  0x92   :  { %v123_v24 = vpop.f32.mrf.mxu1 }
  0x93   :  { %v124_v28 = vadd.f32 %v123_v24, %v81_v22 }
  0x95   :  { %v155_v35 = vadd.f32 %v146_v32, %v124_v28 }
  0x97   :  { %v159_v41 = vmax.f32 %v155_v35, 0.0 }
  0x99   :  { %v84_v26 = vpop.f32.mrf.mxu0 }
  0x9a   :  { %v126_v29 = vpop.f32.mrf.mxu1 }
  0x9b   :  { %v127_v31 = vadd.f32 %v126_v29, %v84_v26 }
  0x9d   :  { %v156_v34 = vadd.f32 %v151_v23, %v127_v31 }
  0x9f   :  { %v160_v37 = vmax.f32 %v156_v34, 0.0 }
  0xa1   :  { %214 = vmatpush.msra.mxu2 %v160_v37  ;;  %291 = vmatpush.msra.mxu3 %v160_v37 }
  0xa3   :  { %215 = vmatpush.msra.mxu2 %v159_v41  ;;  %292 = vmatpush.msra.mxu3 %v159_v41 }
  0xa5   :  { %216 = vmatpush.msra.mxu2 %v158_v42  ;;  %293 = vmatpush.msra.mxu3 %v158_v42 }
  0xa7   :  { %217 = vmatpush.msra.mxu2 %v157_v43  ;;  %294 = vmatpush.msra.mxu3 %v157_v43 }
  0xa8   :  { %286 = vmatmul.msk.f32.vlgmr.msra.gmra.mxu2 %vm189_vm2, %v161_v44  ;;  %289 = vmatmul.msk.f32.vlgmr.msra.gmra.mxu3 %vm189_vm2, %v164_v45 }
  0xb0   :  { %287 = vmatmul.msk.f32.gmra.mxu2 %vm189_vm2, %v162_v46 }
  0xb8   :  { %288 = vmatmul.msk.f32.gmra.mxu2 %vm189_vm2, %v163_v47 }
 0x12b   :  { %v219_v49 = vpop.f32.mrf.mxu2  ;;  %v228_v50 = vpop.f32.mrf.mxu3 }
 0x12c   :  { %v229_v51 = vadd.f32 %v228_v50, %v187_v48  ;;  %v220_v60 = vadd.f32 %v219_v49, %v172_v59 }
 0x12e   :  { %v234_v52 = vmax.f32 %v229_v51, 0.0  ;;  %v231_v63 = vmax.f32 %v220_v60, 0.0 }
 0x130   :  { %253 = vmatpush.msrb.mxu3 %v234_v52 }
 0x133   :  { %v222_v53 = vpop.f32.mrf.mxu2 }
 0x134   :  { %v223_v57 = vadd.f32 %v222_v53, %v177_v54 }
 0x136   :  { %v232_v62 = vmax.f32 %v223_v57, 0.0 }
 0x13b   :  { %v225_v56 = vpop.f32.mrf.mxu2 }
 0x13c   :  { %v226_v58 = vadd.f32 %v225_v56, %v182_v55 }
 0x13e   :  { %v233_v61 = vmax.f32 %v226_v58, 0.0 }
 0x140   :  { %254 = vmatpush.msrb.mxu3 %v233_v61 }
 0x142   :  { %255 = vmatpush.msrb.mxu3 %v232_v62 }
 0x144   :  { %256 = vmatpush.msrb.mxu3 %v231_v63 }
 0x145   :  { %290 = vmatmul.msk.f32.vlgmr.msrb.gmra.mxu3 %vm189_vm2, %v235_v0 }
 0x1c8   :  { %v258_v2 = vpop.f32.mrf.mxu3 }
 0x1c9   :  { %v259_v3 = vadd.f32 %v258_v2, %v237_v1 }
 0x1cb   :  { %261 = vst [vmem:[#allocation3] sm:$0x1] %v259_v3 }
 0x1cc   :  { %272 = dma.vmem_to_hbm [thread:$0]  %s268_s30, 16, %s270_s12, [#allocation4]  }
 0x1cd   :  { %324 = dma.done.wait [#allocation4], 16  }
 0x1ce   :  { %325 = vsyncadd [#allocation4], 4294967280 }
 0x1cf   :  { %277 = vsyncpa [#allocation4], 1 }

</bundles_post_ra>
